<compile_context>
chip_gen: v6e
topology: v6e:2x2x1
jax: 0.10.0
libtpu: 0.0.40
codegen_flags: <defaults>
</compile_context>

<pallas_src>
import jax
import jax.numpy as jnp
from jax.experimental import pallas as pl
from jax.experimental.pallas import tpu as pltpu

LEAKY_SLOPE = 0.01  # nn.LeakyReLU default


def _lrelu(v):
    return jnp.where(v > 0, v, LEAKY_SLOPE * v)


def dnn_kernel(x_ref, w1_ref, b1_ref, w2_ref, b2_ref,
               w4_ref, b4_ref, w3_ref, b3_ref, out_ref):
    # Whole MLP hot path for one batch tile: 4 small MXU matmuls + VPU
    # LeakyReLU + row-wise log-softmax reduction (dim=1).
    x = x_ref[...]

    h = jnp.dot(x, w1_ref[...], preferred_element_type=jnp.float32) + b1_ref[...]
    h = _lrelu(h)

    h = jnp.dot(h, w2_ref[...], preferred_element_type=jnp.float32) + b2_ref[...]
    h = _lrelu(h)

    h = jnp.dot(h, w4_ref[...], preferred_element_type=jnp.float32) + b4_ref[...]
    h = _lrelu(h)

    h = jnp.dot(h, w3_ref[...], preferred_element_type=jnp.float32) + b3_ref[...]
    h = _lrelu(h)

    # log_softmax along dim=1 (classes)
    m = jnp.max(h, axis=1, keepdims=True)
    shifted = h - m
    lse = jnp.log(jnp.sum(jnp.exp(shifted), axis=1, keepdims=True))
    out_ref[...] = shifted - lse


def _round_up(n, m):
    return ((n + m - 1) // m) * m


def dnn_forward(x, params, *, tm=1024):
    """x: (B, 4) float32. params: dict of (in,out) weights / (1,out) biases.
    Returns (B, 10) float32 log-probabilities."""
    B, fin = x.shape
    n_out = params["w3"].shape[1]

    # Batch tile: large (multiple of 256) to amortize per-step overhead and
    # align MXU row groups; shrink for small batches (multiple of 8 for the
    # sublane constraint).
    if B >= tm:
        tm_eff = tm
    else:
        tm_eff = _round_up(max(B, 1), 8)
    b_pad = _round_up(B, tm_eff)
    if b_pad != B:
        x = jnp.pad(x, ((0, b_pad - B), (0, 0)))  # zero rows are harmless

    grid = (b_pad // tm_eff,)

    # x / out: tiled along batch -> automatic double-buffered pipelining.
    # Weights / biases: constant index_map -> VMEM-resident across grid steps.
    in_specs = [
        pl.BlockSpec((tm_eff, fin), lambda i: (i, 0)),
        pl.BlockSpec(params["w1"].shape, lambda i: (0, 0)),
        pl.BlockSpec(params["b1"].shape, lambda i: (0, 0)),
        pl.BlockSpec(params["w2"].shape, lambda i: (0, 0)),
        pl.BlockSpec(params["b2"].shape, lambda i: (0, 0)),
        pl.BlockSpec(params["w4"].shape, lambda i: (0, 0)),
        pl.BlockSpec(params["b4"].shape, lambda i: (0, 0)),
        pl.BlockSpec(params["w3"].shape, lambda i: (0, 0)),
        pl.BlockSpec(params["b3"].shape, lambda i: (0, 0)),
    ]
    out_spec = pl.BlockSpec((tm_eff, n_out), lambda i: (i, 0))

    flops = 2 * b_pad * (4 * 16 + 16 * 32 + 32 * 32 + 32 * 10)
    bytes_accessed = 4 * (b_pad * (fin + n_out)
                          + sum(int(p.size) for p in params.values()))
    cost = pl.CostEstimate(flops=flops,
                           transcendentals=b_pad * n_out,
                           bytes_accessed=bytes_accessed)

    out = pl.pallas_call(
        dnn_kernel,
        out_shape=jax.ShapeDtypeStruct((b_pad, n_out), jnp.float32),
        grid=grid,
        in_specs=in_specs,
        out_specs=out_spec,
        compiler_params=pltpu.CompilerParams(
            dimension_semantics=("parallel",)),
        cost_estimate=cost,
    )(
        x,
        params["w1"], params["b1"],
        params["w2"], params["b2"],
        params["w4"], params["b4"],
        params["w3"], params["b3"],
    )
    return out[:B]


def init_params(key):
    """Deterministic synthetic initialization (shapes match the PyTorch module)."""
    dims = {
        "1": (4, 16),
        "2": (16, 32),
        "4": (32, 32),
        "3": (32, 10),
    }
    params = {}
    for name, (fin, fout) in dims.items():
        key, kw, kb = jax.random.split(key, 3)
        bound = 1.0 / jnp.sqrt(fin)
        # stored as (in, out) so kernel does x @ W  (== x @ W_torch.T + b)
        params[f"w{name}"] = jax.random.uniform(
            kw, (fin, fout), jnp.float32, -bound, bound)
        params[f"b{name}"] = jax.random.uniform(
            kb, (1, fout), jnp.float32, -bound, bound)
    return params


def reference_forward(x, params):
    """Pure-JAX reference for correctness checking."""
    h = _lrelu(x @ params["w1"] + params["b1"])
    h = _lrelu(h @ params["w2"] + params["b2"])
    h = _lrelu(h @ params["w4"] + params["b4"])
    h = _lrelu(h @ params["w3"] + params["b3"])
    return jax.nn.log_softmax(h, axis=1)


if __name__ == "__main__":
    key = jax.random.PRNGKey(0)
    kx, kx2, kp = jax.random.split(key, 3)
    params = init_params(kp)

    # Small-batch check (single tile path).
    B = 8
    x = jax.random.normal(kx, (B, 4), dtype=jnp.float32)
    out = jax.block_until_ready(dnn_forward(x, params))
    ref = reference_forward(x, params)
    assert out.shape == (B, 10)
    assert jnp.allclose(out, ref, atol=1e-5, rtol=1e-5), "mismatch vs reference (B=8)"

    # Multi-tile grid path check (B not a multiple of the tile -> tail padding).
    B2 = 384
    x2 = jax.random.normal(kx2, (B2, 4), dtype=jnp.float32)
    out2 = jax.block_until_ready(dnn_forward(x2, params, tm=128))
    ref2 = reference_forward(x2, params)
    assert out2.shape == (B2, 10)
    assert jnp.allclose(out2, ref2, atol=1e-5, rtol=1e-5), "mismatch vs reference (B=384)"

    print("KERNEL_OK")
</pallas_src>

<mosaic_0001>
module attributes {stable_mosaic.version = 11 : i64} {
  func.func @dnn_kernel(%arg0: i32, %arg1: memref<8x4xf32, #tpu.memory_space<vmem>>, %arg2: memref<4x16xf32, #tpu.memory_space<vmem>>, %arg3: memref<1x16xf32, #tpu.memory_space<vmem>>, %arg4: memref<16x32xf32, #tpu.memory_space<vmem>>, %arg5: memref<1x32xf32, #tpu.memory_space<vmem>>, %arg6: memref<32x32xf32, #tpu.memory_space<vmem>>, %arg7: memref<1x32xf32, #tpu.memory_space<vmem>>, %arg8: memref<32x10xf32, #tpu.memory_space<vmem>>, %arg9: memref<1x10xf32, #tpu.memory_space<vmem>>, %arg10: memref<8x10xf32, #tpu.memory_space<vmem>>) attributes {dimension_semantics = [#tpu.dimension_semantics<parallel>], iteration_bounds = array<i64: 1>, scalar_prefetch = 0 : i64, scratch_operands = 0 : i64, tpu.core_type = #tpu.core_type<tc>, window_params = [{transform_indices = @transform_0, window_bounds = array<i64: 8, 4>}, {pipeline_mode = #tpu.pipeline_mode<synchronous>, transform_indices = @transform_1, window_bounds = array<i64: 4, 16>}, {pipeline_mode = #tpu.pipeline_mode<synchronous>, transform_indices = @transform_2, window_bounds = array<i64: 1, 16>}, {pipeline_mode = #tpu.pipeline_mode<synchronous>, transform_indices = @transform_3, window_bounds = array<i64: 16, 32>}, {pipeline_mode = #tpu.pipeline_mode<synchronous>, transform_indices = @transform_4, window_bounds = array<i64: 1, 32>}, {pipeline_mode = #tpu.pipeline_mode<synchronous>, transform_indices = @transform_5, window_bounds = array<i64: 32, 32>}, {pipeline_mode = #tpu.pipeline_mode<synchronous>, transform_indices = @transform_6, window_bounds = array<i64: 1, 32>}, {pipeline_mode = #tpu.pipeline_mode<synchronous>, transform_indices = @transform_7, window_bounds = array<i64: 32, 10>}, {pipeline_mode = #tpu.pipeline_mode<synchronous>, transform_indices = @transform_8, window_bounds = array<i64: 1, 10>}, {transform_indices = @transform_9, window_bounds = array<i64: 8, 10>}]} {
    %c0 = arith.constant 0 : index
    %c0_0 = arith.constant 0 : index
    %0 = vector.load %arg1[%c0, %c0_0] : memref<8x4xf32, #tpu.memory_space<vmem>>, vector<8x4xf32>
    %c0_1 = arith.constant 0 : index
    %c0_2 = arith.constant 0 : index
    %1 = vector.load %arg2[%c0_1, %c0_2] : memref<4x16xf32, #tpu.memory_space<vmem>>, vector<4x16xf32>
    %cst = arith.constant dense<0.000000e+00> : vector<8x16xf32>
    %2 = tpu.matmul %0, %1, %cst {dimension_numbers = #tpu.dot_dimension_numbers<[1], [0], [0], [1], [0, 0, 1, 1], [], []>} : vector<8x4xf32>, vector<4x16xf32>, vector<8x16xf32> -> vector<8x16xf32>
    %c0_3 = arith.constant 0 : index
    %c0_4 = arith.constant 0 : index
    %3 = vector.load %arg3[%c0_3, %c0_4] : memref<1x16xf32, #tpu.memory_space<vmem>>, vector<1x16xf32>
    %4 = vector.broadcast %3 : vector<1x16xf32> to vector<8x16xf32>
    %5 = arith.addf %2, %4 : vector<8x16xf32>
    %cst_5 = arith.constant 0.000000e+00 : f32
    %6 = vector.broadcast %cst_5 : f32 to vector<8x16xf32>
    %7 = arith.cmpf ogt, %5, %6 : vector<8x16xf32>
    %cst_6 = arith.constant 0.00999999977 : f32
    %8 = vector.broadcast %cst_6 : f32 to vector<8x16xf32>
    %9 = arith.mulf %8, %5 : vector<8x16xf32>
    %10 = arith.select %7, %5, %9 : vector<8x16xi1>, vector<8x16xf32>
    %c0_7 = arith.constant 0 : index
    %c0_8 = arith.constant 0 : index
    %11 = vector.load %arg4[%c0_7, %c0_8] : memref<16x32xf32, #tpu.memory_space<vmem>>, vector<16x32xf32>
    %cst_9 = arith.constant dense<0.000000e+00> : vector<8x32xf32>
    %12 = tpu.matmul %10, %11, %cst_9 {dimension_numbers = #tpu.dot_dimension_numbers<[1], [0], [0], [1], [0, 0, 1, 1], [], []>} : vector<8x16xf32>, vector<16x32xf32>, vector<8x32xf32> -> vector<8x32xf32>
    %c0_10 = arith.constant 0 : index
    %c0_11 = arith.constant 0 : index
    %13 = vector.load %arg5[%c0_10, %c0_11] : memref<1x32xf32, #tpu.memory_space<vmem>>, vector<1x32xf32>
    %14 = vector.broadcast %13 : vector<1x32xf32> to vector<8x32xf32>
    %15 = arith.addf %12, %14 : vector<8x32xf32>
    %cst_12 = arith.constant 0.000000e+00 : f32
    %16 = vector.broadcast %cst_12 : f32 to vector<8x32xf32>
    %17 = arith.cmpf ogt, %15, %16 : vector<8x32xf32>
    %cst_13 = arith.constant 0.00999999977 : f32
    %18 = vector.broadcast %cst_13 : f32 to vector<8x32xf32>
    %19 = arith.mulf %18, %15 : vector<8x32xf32>
    %20 = arith.select %17, %15, %19 : vector<8x32xi1>, vector<8x32xf32>
    %c0_14 = arith.constant 0 : index
    %c0_15 = arith.constant 0 : index
    %21 = vector.load %arg6[%c0_14, %c0_15] : memref<32x32xf32, #tpu.memory_space<vmem>>, vector<32x32xf32>
    %cst_16 = arith.constant dense<0.000000e+00> : vector<8x32xf32>
    %22 = tpu.matmul %20, %21, %cst_16 {dimension_numbers = #tpu.dot_dimension_numbers<[1], [0], [0], [1], [0, 0, 1, 1], [], []>} : vector<8x32xf32>, vector<32x32xf32>, vector<8x32xf32> -> vector<8x32xf32>
    %c0_17 = arith.constant 0 : index
    %c0_18 = arith.constant 0 : index
    %23 = vector.load %arg7[%c0_17, %c0_18] : memref<1x32xf32, #tpu.memory_space<vmem>>, vector<1x32xf32>
    %24 = vector.broadcast %23 : vector<1x32xf32> to vector<8x32xf32>
    %25 = arith.addf %22, %24 : vector<8x32xf32>
    %cst_19 = arith.constant 0.000000e+00 : f32
    %26 = vector.broadcast %cst_19 : f32 to vector<8x32xf32>
    %27 = arith.cmpf ogt, %25, %26 : vector<8x32xf32>
    %cst_20 = arith.constant 0.00999999977 : f32
    %28 = vector.broadcast %cst_20 : f32 to vector<8x32xf32>
    %29 = arith.mulf %28, %25 : vector<8x32xf32>
    %30 = arith.select %27, %25, %29 : vector<8x32xi1>, vector<8x32xf32>
    %c0_21 = arith.constant 0 : index
    %c0_22 = arith.constant 0 : index
    %31 = vector.load %arg8[%c0_21, %c0_22] : memref<32x10xf32, #tpu.memory_space<vmem>>, vector<32x10xf32>
    %cst_23 = arith.constant dense<0.000000e+00> : vector<8x10xf32>
    %32 = tpu.matmul %30, %31, %cst_23 {dimension_numbers = #tpu.dot_dimension_numbers<[1], [0], [0], [1], [0, 0, 1, 1], [], []>} : vector<8x32xf32>, vector<32x10xf32>, vector<8x10xf32> -> vector<8x10xf32>
    %c0_24 = arith.constant 0 : index
    %c0_25 = arith.constant 0 : index
    %33 = vector.load %arg9[%c0_24, %c0_25] : memref<1x10xf32, #tpu.memory_space<vmem>>, vector<1x10xf32>
    %34 = vector.broadcast %33 : vector<1x10xf32> to vector<8x10xf32>
    %35 = arith.addf %32, %34 : vector<8x10xf32>
    %cst_26 = arith.constant 0.000000e+00 : f32
    %36 = vector.broadcast %cst_26 : f32 to vector<8x10xf32>
    %37 = arith.cmpf ogt, %35, %36 : vector<8x10xf32>
    %cst_27 = arith.constant 0.00999999977 : f32
    %38 = vector.broadcast %cst_27 : f32 to vector<8x10xf32>
    %39 = arith.mulf %38, %35 : vector<8x10xf32>
    %40 = arith.select %37, %35, %39 : vector<8x10xi1>, vector<8x10xf32>
    %cst_28 = arith.constant dense<0xFF800000> : vector<8xf32>
    %41 = vector.multi_reduction <maximumf>, %40, %cst_28 [1] : vector<8x10xf32> to vector<8xf32>
    %42 = vector.shape_cast %41 : vector<8xf32> to vector<8x1xf32>
    %43 = vector.broadcast %42 : vector<8x1xf32> to vector<8x10xf32>
    %44 = arith.subf %40, %43 : vector<8x10xf32>
    %45 = math.exp %44 : vector<8x10xf32>
    %cst_29 = arith.constant dense<0.000000e+00> : vector<8xf32>
    %46 = vector.multi_reduction <add>, %45, %cst_29 [1] : vector<8x10xf32> to vector<8xf32>
    %47 = vector.shape_cast %46 : vector<8xf32> to vector<8x1xf32>
    %48 = math.log %47 : vector<8x1xf32>
    %49 = vector.broadcast %48 : vector<8x1xf32> to vector<8x10xf32>
    %50 = arith.subf %44, %49 : vector<8x10xf32>
    %c0_30 = arith.constant 0 : index
    %c0_31 = arith.constant 0 : index
    %51 = vector.load %arg10[%c0_30, %c0_31] : memref<8x10xf32, #tpu.memory_space<vmem>>, vector<8x10xf32>
    tpu.vector_store %arg10[%c0_30, %c0_31], %50 {strides = array<i32>} : memref<8x10xf32, #tpu.memory_space<vmem>>, vector<8x10xf32>,
    return
  }
  func.func @transform_0(%arg0: i32) -> (i32, i32) {
    %c0_i32 = arith.constant 0 : i32
    %c0_i32_0 = arith.constant 0 : i32
    return %arg0, %c0_i32 : i32, i32
  }
  func.func @transform_1(%arg0: i32) -> (i32, i32) {
    %c0_i32 = arith.constant 0 : i32
    %c0_i32_0 = arith.constant 0 : i32
    %c0_i32_1 = arith.constant 0 : i32
    return %c0_i32, %c0_i32_0 : i32, i32
  }
  func.func @transform_2(%arg0: i32) -> (i32, i32) {
    %c0_i32 = arith.constant 0 : i32
    %c0_i32_0 = arith.constant 0 : i32
    %c0_i32_1 = arith.constant 0 : i32
    return %c0_i32, %c0_i32_0 : i32, i32
  }
  func.func @transform_3(%arg0: i32) -> (i32, i32) {
    %c0_i32 = arith.constant 0 : i32
    %c0_i32_0 = arith.constant 0 : i32
    %c0_i32_1 = arith.constant 0 : i32
    return %c0_i32, %c0_i32_0 : i32, i32
  }
  func.func @transform_4(%arg0: i32) -> (i32, i32) {
    %c0_i32 = arith.constant 0 : i32
    %c0_i32_0 = arith.constant 0 : i32
    %c0_i32_1 = arith.constant 0 : i32
    return %c0_i32, %c0_i32_0 : i32, i32
  }
  func.func @transform_5(%arg0: i32) -> (i32, i32) {
    %c0_i32 = arith.constant 0 : i32
    %c0_i32_0 = arith.constant 0 : i32
    %c0_i32_1 = arith.constant 0 : i32
    return %c0_i32, %c0_i32_0 : i32, i32
  }
  func.func @transform_6(%arg0: i32) -> (i32, i32) {
    %c0_i32 = arith.constant 0 : i32
    %c0_i32_0 = arith.constant 0 : i32
    %c0_i32_1 = arith.constant 0 : i32
    return %c0_i32, %c0_i32_0 : i32, i32
  }
  func.func @transform_7(%arg0: i32) -> (i32, i32) {
    %c0_i32 = arith.constant 0 : i32
    %c0_i32_0 = arith.constant 0 : i32
    %c0_i32_1 = arith.constant 0 : i32
    return %c0_i32, %c0_i32_0 : i32, i32
  }
  func.func @transform_8(%arg0: i32) -> (i32, i32) {
    %c0_i32 = arith.constant 0 : i32
    %c0_i32_0 = arith.constant 0 : i32
    %c0_i32_1 = arith.constant 0 : i32
    return %c0_i32, %c0_i32_0 : i32, i32
  }
  func.func @transform_9(%arg0: i32) -> (i32, i32) {
    %c0_i32 = arith.constant 0 : i32
    %c0_i32_0 = arith.constant 0 : i32
    return %arg0, %c0_i32 : i32, i32
  }
}

</mosaic_0001>

<bundles_post_ra>
// kernel: tpu_custom_call.1
= control target key start
LH: loop header
LB: loop body
LE: loop exit
PB: predicated region body
PF: predicated region fallthrough
CT: control target
= control target key end

     0   :  { %vm46_vm0 = vcmask 1043456   ;;  %v499_v2 = vmov 0.0   ;;  %vm500_vm1 = vmmov 0   ;;  %vm42_vm2 = vcmask 31744   ;;  %s612_s0 = inlined_call_operand.vmem [shape: f32[8,4], index: 0, kind: input, shape index: {}]   ;;  %s613_s1 = inlined_call_operand.vmem [shape: f32[4,16], index: 1, kind: input, shape index: {}]   ;;  %s614_s2 = inlined_call_operand.vmem [shape: f32[1,16], index: 2, kind: input, shape index: {}]   ;;  %s615_s3 = inlined_call_operand.vmem [shape: f32[16,32], index: 3, kind: input, shape index: {}]   ;;  %s616_s4 = inlined_call_operand.vmem [shape: f32[1,32], index: 4, kind: input, shape index: {}]   ;;  %s617_s5 = inlined_call_operand.vmem [shape: f32[32,32], index: 5, kind: input, shape index: {}]   ;;  %s618_s6 = inlined_call_operand.vmem [shape: f32[1,32], index: 6, kind: input, shape index: {}]   ;;  %s619_s7 = inlined_call_operand.vmem [shape: f32[32,10], index: 7, kind: input, shape index: {}]   ;;  %s620_s8 = inlined_call_operand.vmem [shape: f32[1,10], index: 8, kind: input, shape index: {}]   ;;  %s621_s9 = inlined_call_operand.hbm [shape: f32[8,10], index: 9, kind: output, shape index: {}]  }
   0x1   :  { %v34_v0 = vld [vmem:[%s613_s1] sm:$0xf]  ;;  %436 = vmatprep.subr.mxu0 %v499_v2  ;;  %438 = vmatprep.mubr.msk.f32.mxu0 %vm500_vm1, %v499_v2 }
   0x2   :  { %v33_v1 = vld [vmem:[%s612_s0] sm:$0xff] }
   0x3   :  { %14 = vsyncpa [#allocation3], 0  ;;  %437 = vmatpush3.msk.msra.mxu0 %vm46_vm0, %v34_v0  ;;  %441 = vmatprep.subr.mxu1 %v499_v2  ;;  %v124_v3 = vld [vmem:[%s615_s3 + $0x8] sm:$0xff]  ;;  %v123_v4 = vld [vmem:[%s615_s3] sm:$0xff]  ;;  %vm132_vm4 = vcmask 130048   ;;  %vm220_vm6 = vcmask 261120  }
   0x4   :  { %439 = vmatmul.mubr.msk.f32.vlgmr.msra.gmra.mxu0 %vm42_vm2, %v33_v1  ;;  %445 = vmatprep.mubr.msk.f32.mxu1 %vm500_vm1, %v499_v2  ;;  %v212_v5 = vld [vmem:[%s617_s5 + $0x18] sm:$0xff]  ;;  %v412_v6 = vld [vmem:[%s614_s2] ss:$0 sm:$0xff]  ;;  %v211_v12 = vld [vmem:[%s617_s5 + $0x10] sm:$0xff]  ;;  %vm384_vm9 = vcmask 80896  }
   0x5   :  { %448 = vmatprep.subr.mxu0 %v499_v2  ;;  %456 = vmatprep.mubr.msk.f32.mxu0 %vm500_vm1, %v499_v2  ;;  %v210_v13 = vld [vmem:[%s617_s5 + $0x8] sm:$0xff]  ;;  %v209_v14 = vld [vmem:[%s617_s5] sm:$0xff]  ;;  %v300_v15 = vld [vmem:[%s619_s7 + $0x18] sm:$0xff] }
   0x6   :  { %442 = vmatpush3.msra.mxu1 %v124_v3  ;;  %449 = vmatpush3.msra.mxu0 %v212_v5  ;;  %v415_v16 = vld [vmem:[%s616_s4] ss:$0 sm:$0xff]  ;;  %v299_v22 = vld [vmem:[%s619_s7 + $0x10] sm:$0xff]  ;;  %v298_v23 = vld [vmem:[%s619_s7 + $0x8] sm:$0xff] }
   0x7   :  { %443 = vmatprep.subr.mxu1 %v499_v2  ;;  %450 = vmatprep.subr.mxu0 %v499_v2  ;;  %v297_v24 = vld [vmem:[%s619_s7] sm:$0xff] }
   0x8   :  { %444 = vmatpush3.msra.mxu1 %v123_v4  ;;  %451 = vmatpush3.msra.mxu0 %v211_v12  ;;  %v417_v25 = vld [vmem:[%s618_s6] ss:$0 sm:$0xff]  ;;  %s501_s6 = smov [#allocation2]  }
   0x9   :  { %459 = vmatprep.subr.mxu1 %v499_v2  ;;  %452 = vmatprep.subr.mxu0 %v499_v2  ;;  %v419_v31 = vld [vmem:[%s620_s8] ss:$0 sm:$0xff]  ;;  %s404_s7 = sshll.u32 %s501_s6, 4  ;;  %s405_s7 = int_to_ptr.vmem [resolvable:$true] %s404_s7 }
   0xa   :  { %453 = vmatpush3.msra.mxu0 %v210_v13  ;;  %s477_s8 = scalar_lea.vmem %s405_s7, 128  ;;  %p482_p1 = scmp.lt.s32.totalorder %s405_s7, %s405_s7 }
   0xb   :  { %454 = vmatprep.subr.mxu0 %v499_v2  ;;  %p478_p0 = scmp.ne.s32.totalorder %s405_s7, %s477_s8  ;;  %p483_p2 = scmp.lt.s32.totalorder %s477_s8, %s477_s8 }
   0xc   :  { %455 = vmatpush3.msra.mxu0 %v209_v14 }
   0xd   :  { %p484_p3 = por %p483_p2, %p482_p1 }
   0xf   :  { %p485_p4 = pnand %p484_p3, %p478_p0 }
  0xc4   :  { %v116_v7 = vpop.f32.mrf.mxu0 }
  0xc5   :  { %v117_v8 = vadd.f32 %v412_v6, %v116_v7 }
  0xc6   :  { %v440_v9 = vpop.f32.mrf.mxu0 }
  0xc7   :  { %vm120_vm3 = vcmp.gt.f32.partialorder %v117_v8, 0.0  ;;  %v121_v10 = vmul.f32 0.01, %v117_v8 }
  0xc9   :  { %v122_v11 = vsel %vm120_vm3, %v117_v8, %v121_v10 }
  0xca   :  { %446 = vmatmul.mubr.msk.f32.vlgmr.msra.gmra.mxu1 %vm132_vm4, %v122_v11 }
  0xcb   :  { %467 = vmatprep.mubr.msk.f32.mxu1 %vm500_vm1, %v499_v2  ;;  %460 = vmatpush3.msra.mxu1 %v300_v15 }
  0xcc   :  { %461 = vmatprep.subr.mxu1 %v499_v2 }
  0xcd   :  { %462 = vmatpush3.msra.mxu1 %v299_v22 }
  0xce   :  { %463 = vmatprep.subr.mxu1 %v499_v2 }
  0xcf   :  { %464 = vmatpush3.msra.mxu1 %v298_v23 }
  0xd0   :  { %465 = vmatprep.subr.mxu1 %v499_v2 }
  0xd1   :  { %466 = vmatpush3.msra.mxu1 %v297_v24 }
 0x18a   :  { %v202_v17 = vpop.f32.mrf.mxu1 }
 0x18b   :  { %v203_v18 = vadd.f32 %v415_v16, %v202_v17 }
 0x18c   :  { %v447_v19 = vpop.f32.mrf.mxu1 }
 0x18d   :  { %vm206_vm5 = vcmp.gt.f32.partialorder %v203_v18, 0.0  ;;  %v207_v20 = vmul.f32 0.01, %v203_v18 }
 0x18f   :  { %v208_v21 = vsel %vm206_vm5, %v203_v18, %v207_v20 }
 0x190   :  { %457 = vmatmul.mubr.msk.f32.vlgmr.msra.gmra.mxu0 %vm220_vm6, %v208_v21 }
 0x250   :  { %v290_v26 = vpop.f32.mrf.mxu0 }
 0x251   :  { %v291_v27 = vadd.f32 %v417_v25, %v290_v26 }
 0x252   :  { %v458_v28 = vpop.f32.mrf.mxu0 }
 0x253   :  { %vm294_vm7 = vcmp.gt.f32.partialorder %v291_v27, 0.0  ;;  %v295_v29 = vmul.f32 0.01, %v291_v27 }
 0x255   :  { %v296_v30 = vsel %vm294_vm7, %v291_v27, %v295_v29 }
 0x256   :  { %468 = vmatmul.mubr.msk.f32.vlgmr.msra.gmra.mxu1 %vm220_vm6, %v296_v30 }
 0x316   :  { %v377_v32 = vpop.f32.mrf.mxu1 }
 0x317   :  { %v378_v33 = vadd.f32 %v419_v31, %v377_v32 }
 0x318   :  { %v469_v34 = vpop.f32.mrf.mxu1 }
 0x319   :  { %v382_v35 = vmul.f32 0.01, %v378_v33  ;;  %vm381_vm8 = vcmp.gt.f32.partialorder %v378_v33, 0.0 }
 0x31b   :  { %v383_v36 = vsel %vm381_vm8, %v378_v33, %v382_v35 }
 0x31c   :  { %v385_v37 = vsel %vm384_vm9, %v383_v36, -inf }
 0x31d   :  { %386 = vmax.xlane.f32.xlu0 %v385_v37 }
 0x3a6   :  { %v387_v38 = vpop.xlane.xlu0 %386 }
 0x3a7   :  { %v388_v39 = vsub.f32 %v383_v36, %v387_v38 }
 0x3a9   :  { %v389_v40 = vmul.f32 1.442695, %v388_v39 }
 0x3ab   :  { %473 = vpow2.f32 %v389_v40 }
 0x3b8   :  { %v474_v41 = vpop.eup %473 }
 0x3b9   :  { %v391_v42 = vsel %vm384_vm9, %v474_v41, 0.0 }
 0x3ba   :  { %392 = vadd.xlane.f32.xlu0 %v391_v42 }
 0x443   :  { %v393_v43 = vpop.xlane.xlu0 %392 }
 0x444   :  { %475 = vlog2.f32 %v393_v43 }
 0x451   :  { %v476_v44 = vpop.eup %475 }
 0x452   :  { %v395_v45 = vmul.f32 0.6931472, %v476_v44 }
 0x454   :  { %v396_v46 = vsub.f32 %v388_v39, %v395_v45 }
 0x456   :  { %397 = vst.msk [vmem:[#allocation2] sm:$0xff] %vm384_vm9, %v396_v46 }
 0x457   :  { %488 = shalt.err (!%p485_p4)
}
 0x458   :  { %407 = dma.vmem_to_hbm [thread:$0]  %s405_s7, 128, %s621_s9, [#allocation3]  }
 0x459   :  { %497 = dma.done.wait [#allocation3], 128  }
 0x45a   :  { %498 = vsyncadd [#allocation3], 4294967168 }
 0x45b   :  { %411 = vsyncpa [#allocation3], 1 }

</bundles_post_ra>
